<compile_context>
chip_gen: v7x
topology: tpu7x:2x2x1
jax: 0.10.0
libtpu: 0.0.40
codegen_flags: <defaults>
</compile_context>

<pallas_src>
import functools

import numpy as np
import jax
import jax.numpy as jnp
from jax import lax
from jax.experimental import pallas as pl
from jax.experimental.pallas import tpu as pltpu


def _vmem_limit_bytes():
    # ~100 MiB on v5e/v6e (128 MiB physical), ~80% of physical on v7x (64 MiB).
    try:
        cap = int(pltpu.get_tpu_info().vmem_capacity_bytes)
    except Exception:
        cap = 64 * 1024 * 1024
    return int(min(cap * 0.80, 100 * 1024 * 1024))


def _fps_kernel(xyz3r_ref, centers_ref, *, G, N_valid):
    """Farthest point sampling for one batch element.

    xyz3r_ref  : (1, 3, 8, N/8)  coordinates in full-vreg (8, N/8) planes
    centers_ref: (1, G, 3)       sampled FPS centers (one row written per step)
    """
    N8 = xyz3r_ref.shape[-1]
    N = 8 * N8
    x0 = xyz3r_ref[0, 0]                                     # (8, N8)
    x1 = xyz3r_ref[0, 1]
    x2 = xyz3r_ref[0, 2]

    # global point index of each (sublane, lane) slot: n = row * N8 + col
    idx2d = (lax.broadcasted_iota(jnp.int32, (8, N8), 0) * N8
             + lax.broadcasted_iota(jnp.int32, (8, N8), 1))
    # padded points pinned to -1 so they never win the argmax
    dist0 = jnp.where(idx2d < N_valid, jnp.inf, -1.0).astype(jnp.float32)

    # TODO(synk): PyTorch farthest_point_sample seeds with torch.randint; here
    # we deterministically start from point index 0.
    def body(i, carry):
        distance, farthest = carry                           # (8,N8) f32, () i32
        sel = idx2d == farthest                              # exactly one slot
        cx = jnp.sum(jnp.where(sel, x0, 0.0), keepdims=True)  # (1,1) exact gather
        cy = jnp.sum(jnp.where(sel, x1, 0.0), keepdims=True)
        cz = jnp.sum(jnp.where(sel, x2, 0.0), keepdims=True)
        centers_ref[0, pl.ds(i, 1), :] = jnp.concatenate([cx, cy, cz], axis=1)
        dxx = x0 - cx
        dyy = x1 - cy
        dzz = x2 - cz
        d = dxx * dxx + dyy * dyy + dzz * dzz
        distance = jnp.minimum(distance, d)                  # padded slots stay -1
        dmax = jnp.max(distance)
        farthest = jnp.min(
            jnp.where(distance == dmax, idx2d, N)).astype(jnp.int32)  # lowest-index tie-break
        return distance, farthest

    lax.fori_loop(0, G, body, (dist0, jnp.int32(0)))


def _knn_kernel(pts8_ref, centT_ref, grouped_ref, *, M, N_valid):
    """kNN selection + one-hot MXU gather for one (batch, G-tile) cell.

    pts8_ref   : (1, 8, N)      channel rows [x, y, z, r, g, b, |p|^2, 0]
    centT_ref  : (1, 3, GT)     FPS centers of this G tile, coordinate rows
    grouped_ref: (1, M, 8, GT)  rows 0..2 centered xyz, 3..5 color, 6..7 junk
    """
    N = pts8_ref.shape[-1]
    GT = centT_ref.shape[-1]
    pts8 = pts8_ref[0]                                       # (8, N)  f32
    cT = centT_ref[0]                                        # (3, GT) f32

    # Squared distances via the same expansion PyTorch square_distance uses:
    #   d[n, g] = |p_n|^2 - 2 p_n.c_g + |c_g|^2
    # One small TN MXU matmul; the |p|^2 term rides in channel row 6 of pts8.
    ones_row = jnp.ones((1, GT), jnp.float32)
    zeros_row = jnp.zeros((1, GT), jnp.float32)
    rhs8 = jnp.concatenate(
        [-2.0 * cT, jnp.zeros((3, GT), jnp.float32), ones_row, zeros_row], axis=0)
    c2 = jnp.sum(cT * cT, axis=0, keepdims=True)             # (1, GT)
    d0 = lax.dot_general(pts8, rhs8, (((0,), (0,)), ((), ())),
                         preferred_element_type=jnp.float32,
                         precision=lax.Precision.HIGHEST) + c2   # (N, GT)
    # mask padded points once per tile (iota is generated, never resident)
    d0 = jnp.where(
        lax.broadcasted_iota(jnp.int32, (N, GT), 0) < N_valid, d0, jnp.inf)

    # rows to subtract after the gather: xyz centered, colors untouched
    cpad8 = jnp.concatenate([cT, jnp.zeros((5, GT), jnp.float32)], axis=0)  # (8, GT)

    def body(m, d):
        dmin = jnp.min(d, axis=0, keepdims=True)                            # (1, GT)
        iota = lax.broadcasted_iota(jnp.int32, (N, GT), 0)                  # regenerated, no loads
        amin = jnp.min(jnp.where(d == dmin, iota, N), axis=0,
                       keepdims=True)                                       # lowest-index tie-break
        hit = iota == amin                                                  # (N, GT)
        onehot = jnp.where(hit, jnp.float32(1.0), jnp.float32(0.0))
        # Exact gather on the MXU: f32 inputs + HIGHEST precision, single
        # non-zero term per column -> gathered values are bit-exact.
        g8 = lax.dot_general(pts8, onehot, (((1,), (0,)), ((), ())),
                             preferred_element_type=jnp.float32,
                             precision=lax.Precision.HIGHEST)               # (8, GT)
        g8 = g8 - cpad8
        grouped_ref[0, pl.ds(m, 1)] = g8.reshape(1, 8, GT).astype(grouped_ref.dtype)
        return jnp.where(hit, jnp.inf, d)                                   # knock out chosen point

    lax.fori_loop(0, M, body, d0)


def group_forward(xyz, color, *, num_group, group_size, g_tile=128):
    """JAX/Pallas equivalent of Group.forward -> (neighborhood, center, features)."""
    B, N, C = xyz.shape
    assert C == 3 and color.shape == (B, N, 3)
    G, M = num_group, group_size
    assert M <= N

    xyz = xyz.astype(jnp.float32)
    color = color.astype(jnp.float32)

    # G tiling for the kNN stage (keeps the (N, GT) live set ~4-8 MiB at
    # production sizes; mandatory for v7x's 64 MiB VMEM).
    gt = g_tile if (G % g_tile == 0) else G
    n_gt = G // gt

    # Pad N to a multiple of 1024 (= 8 sublanes x 128 lanes) so the (8, N/8)
    # FPS planes and the (N, GT) kNN slabs are full-vreg.
    N_pad = ((N + 1023) // 1024) * 1024
    pad = N_pad - N
    xyz_p = jnp.pad(xyz, ((0, 0), (0, pad), (0, 0))) if pad else xyz
    col_p = jnp.pad(color, ((0, 0), (0, pad), (0, 0))) if pad else color

    # plain-JAX glue (layout plumbing only):
    xyzT = jnp.transpose(xyz_p, (0, 2, 1))                   # (B, 3, N_pad)
    colT = jnp.transpose(col_p, (0, 2, 1))                   # (B, 3, N_pad)
    p2 = jnp.sum(xyz_p * xyz_p, axis=-1)[:, None, :]         # (B, 1, N_pad)
    zero = jnp.zeros_like(p2)
    # channel rows [x, y, z, r, g, b, |p|^2, 0] -- lane-dense, feeds both matmuls
    pts8 = jnp.concatenate([xyzT, colT, p2, zero], axis=1)   # (B, 8, N_pad)
    # (8, N/8) planes for FPS (contiguous reshape of xyzT, free)
    xyz3r = xyzT.reshape(B, 3, 8, N_pad // 8)

    vmem_limit = _vmem_limit_bytes()

    # ---------------- stage 1: farthest point sampling (grid over B) ---------
    fps_kernel = functools.partial(_fps_kernel, G=G, N_valid=N)
    centers = pl.pallas_call(
        fps_kernel,
        out_shape=jax.ShapeDtypeStruct((B, G, 3), jnp.float32),
        grid_spec=pltpu.PrefetchScalarGridSpec(
            num_scalar_prefetch=0,
            grid=(B,),
            in_specs=[pl.BlockSpec((1, 3, 8, N_pad // 8),
                                   lambda b: (b, 0, 0, 0))],
            out_specs=pl.BlockSpec((1, G, 3), lambda b: (b, 0, 0)),
        ),
        compiler_params=pltpu.CompilerParams(
            dimension_semantics=("parallel",),
            vmem_limit_bytes=vmem_limit),
        cost_estimate=pl.CostEstimate(
            flops=int(12 * B * G * N_pad), transcendentals=0,
            bytes_accessed=int(4 * B * (3 * N_pad + 3 * G))),
    )(xyz3r)

    centT = jnp.transpose(centers, (0, 2, 1))                # (B, 3, G) lane-dense

    # ---------------- stage 2: kNN + gather (grid over (B, G tiles)) ---------
    knn_kernel = functools.partial(_knn_kernel, M=M, N_valid=N)
    grouped8 = pl.pallas_call(
        knn_kernel,
        out_shape=jax.ShapeDtypeStruct((B, M, 8, G), jnp.float32),
        grid_spec=pltpu.PrefetchScalarGridSpec(
            num_scalar_prefetch=0,
            grid=(B, n_gt),
            in_specs=[
                # same block across G tiles -> DMA'd once per batch element
                pl.BlockSpec((1, 8, N_pad), lambda b, g: (b, 0, 0)),
                pl.BlockSpec((1, 3, gt), lambda b, g: (b, 0, g)),
            ],
            out_specs=pl.BlockSpec((1, M, 8, gt), lambda b, g: (b, 0, 0, g)),
        ),
        compiler_params=pltpu.CompilerParams(
            dimension_semantics=("parallel", "parallel"),
            vmem_limit_bytes=vmem_limit),
        cost_estimate=pl.CostEstimate(
            flops=int(B * (16 * N_pad * G + M * 20 * N_pad * G)),
            transcendentals=0,
            bytes_accessed=int(4 * B * (8 * N_pad + 3 * G + M * 8 * G))),
    )(pts8, centT)

    # plain-JAX glue: back to the PyTorch layout; drop the 2 pad channels.
    feats8 = jnp.transpose(grouped8, (0, 3, 1, 2))           # (B, G, M, 8)
    neighborhood = feats8[..., :3]                           # centered xyz
    features = feats8[..., :6]                               # [centered xyz; color]
    return neighborhood, centers, features


def _group_ref_numpy(xyz, color, G, M):
    """Pure-numpy (float64) reference replicating the PyTorch semantics (FPS start = 0)."""
    xyz = np.asarray(xyz, np.float64)
    color = np.asarray(color, np.float64)
    B, N, _ = xyz.shape
    nbhd = np.zeros((B, G, M, 3), np.float64)
    cent = np.zeros((B, G, 3), np.float64)
    feat = np.zeros((B, G, M, 6), np.float64)
    for b in range(B):
        pts, col = xyz[b], color[b]
        distance = np.full(N, 1e10, np.float64)
        farthest = 0
        cidx = np.zeros(G, np.int64)
        for i in range(G):
            cidx[i] = farthest
            d = np.sum((pts - pts[farthest]) ** 2, -1)
            distance = np.minimum(distance, d)
            farthest = int(np.argmax(distance))
        c = pts[cidx]                                             # (G, 3)
        sqd = np.sum((c[:, None, :] - pts[None, :, :]) ** 2, -1)  # (G, N)
        order = np.argsort(sqd, axis=-1, kind="stable")[:, :M]    # ascending
        nb = pts[order]
        nbc = col[order]
        cent[b] = c
        nbhd[b] = nb - c[:, None, :]
        feat[b] = np.concatenate([nbhd[b], nbc], -1)
    return (nbhd.astype(np.float32), cent.astype(np.float32),
            feat.astype(np.float32))


if __name__ == "__main__":
    key = jax.random.PRNGKey(0)
    k1, k2 = jax.random.split(key)

    B, N = 2, 64
    num_group, group_size = 8, 16

    xyz = jax.random.uniform(k1, (B, N, 3), dtype=jnp.float32)
    color = jax.random.uniform(k2, (B, N, 3), dtype=jnp.float32)

    neighborhood, center, features = group_forward(
        xyz, color, num_group=num_group, group_size=group_size)
    neighborhood, center, features = jax.block_until_ready(
        (neighborhood, center, features))

    assert neighborhood.shape == (B, num_group, group_size, 3)
    assert center.shape == (B, num_group, 3)
    assert features.shape == (B, num_group, group_size, 6)

    r_nbhd, r_cent, r_feat = _group_ref_numpy(xyz, color, num_group, group_size)
    np.testing.assert_allclose(np.asarray(center), r_cent, rtol=1e-5, atol=1e-5)
    np.testing.assert_allclose(np.asarray(neighborhood), r_nbhd, rtol=1e-5, atol=1e-5)
    np.testing.assert_allclose(np.asarray(features), r_feat, rtol=1e-5, atol=1e-5)

    print("KERNEL_OK")
</pallas_src>

<mosaic_0001>
module attributes {stable_mosaic.version = 11 : i64} {
  func.func @_fps_kernel(%arg0: i32, %arg1: memref<1x3x8x128xf32, #tpu.memory_space<vmem>>, %arg2: memref<1x8x3xf32, #tpu.memory_space<vmem>>) attributes {dimension_semantics = [#tpu.dimension_semantics<parallel>], iteration_bounds = array<i64: 2>, scalar_prefetch = 0 : i64, scratch_operands = 0 : i64, tpu.core_type = #tpu.core_type<tc>, window_params = [{transform_indices = @transform_0, window_bounds = array<i64: 1, 3, 8, 128>}, {transform_indices = @transform_1, window_bounds = array<i64: 1, 8, 3>}]} {
    %c0 = arith.constant 0 : index
    %c0_0 = arith.constant 0 : index
    %c0_1 = arith.constant 0 : index
    %c0_2 = arith.constant 0 : index
    %0 = vector.load %arg1[%c0, %c0_0, %c0_1, %c0_2] : memref<1x3x8x128xf32, #tpu.memory_space<vmem>>, vector<1x1x8x128xf32>
    %1 = vector.shape_cast %0 : vector<1x1x8x128xf32> to vector<8x128xf32>
    %c0_3 = arith.constant 0 : index
    %c1 = arith.constant 1 : index
    %c0_4 = arith.constant 0 : index
    %c0_5 = arith.constant 0 : index
    %2 = vector.load %arg1[%c0_3, %c1, %c0_4, %c0_5] : memref<1x3x8x128xf32, #tpu.memory_space<vmem>>, vector<1x1x8x128xf32>
    %3 = vector.shape_cast %2 : vector<1x1x8x128xf32> to vector<8x128xf32>
    %c0_6 = arith.constant 0 : index
    %c2 = arith.constant 2 : index
    %c0_7 = arith.constant 0 : index
    %c0_8 = arith.constant 0 : index
    %4 = vector.load %arg1[%c0_6, %c2, %c0_7, %c0_8] : memref<1x3x8x128xf32, #tpu.memory_space<vmem>>, vector<1x1x8x128xf32>
    %5 = vector.shape_cast %4 : vector<1x1x8x128xf32> to vector<8x128xf32>
    %6 = tpu.iota {dimensions = array<i32: 0>} : vector<8x128xi32>
    %c128_i32 = arith.constant 128 : i32
    %7 = vector.broadcast %c128_i32 : i32 to vector<8x128xi32>
    %8 = arith.muli %6, %7 : vector<8x128xi32>
    %9 = tpu.iota {dimensions = array<i32: 1>} : vector<8x128xi32>
    %10 = arith.addi %8, %9 : vector<8x128xi32>
    %c64_i32 = arith.constant 64 : i32
    %11 = vector.broadcast %c64_i32 : i32 to vector<8x128xi32>
    %12 = arith.cmpi slt, %10, %11 : vector<8x128xi32>
    %cst = arith.constant 0x7F800000 : f32
    %cst_9 = arith.constant -1.000000e+00 : f32
    %13 = vector.broadcast %cst : f32 to vector<8x128xf32>
    %14 = vector.broadcast %cst_9 : f32 to vector<8x128xf32>
    %15 = arith.select %12, %13, %14 : vector<8x128xi1>, vector<8x128xf32>
    %c0_i32 = arith.constant 0 : i32
    %c0_i32_10 = arith.constant 0 : i32
    %c8_i32 = arith.constant 8 : i32
    %16 = arith.addi %c0_i32_10, %c8_i32 : i32
    %c1_i32 = arith.constant 1 : i32
    %17:2 = scf.for %arg3 = %c0_i32_10 to %16 step %c1_i32 iter_args(%arg4 = %15, %arg5 = %c0_i32) -> (vector<8x128xf32>, i32)  : i32 {
      %18 = vector.broadcast %arg5 : i32 to vector<8x128xi32>
      %19 = arith.cmpi eq, %10, %18 : vector<8x128xi32>
      %cst_12 = arith.constant 0.000000e+00 : f32
      %20 = vector.broadcast %cst_12 : f32 to vector<8x128xf32>
      %21 = arith.select %19, %1, %20 : vector<8x128xi1>, vector<8x128xf32>
      %22 = vector.shape_cast %21 : vector<8x128xf32> to vector<1x8x128xf32>
      %cst_13 = arith.constant dense<0.000000e+00> : vector<1xf32>
      %23 = vector.multi_reduction <add>, %22, %cst_13 [1, 2] : vector<1x8x128xf32> to vector<1xf32>
      %24 = vector.shape_cast %23 : vector<1xf32> to vector<1x1x1xf32>
      %25 = vector.extract %24[0, 0, 0] : f32 from vector<1x1x1xf32>
      %26 = vector.broadcast %25 : f32 to vector<1x1xf32>
      %cst_14 = arith.constant 0.000000e+00 : f32
      %27 = vector.broadcast %cst_14 : f32 to vector<8x128xf32>
      %28 = arith.select %19, %3, %27 : vector<8x128xi1>, vector<8x128xf32>
      %29 = vector.shape_cast %28 : vector<8x128xf32> to vector<1x8x128xf32>
      %cst_15 = arith.constant dense<0.000000e+00> : vector<1xf32>
      %30 = vector.multi_reduction <add>, %29, %cst_15 [1, 2] : vector<1x8x128xf32> to vector<1xf32>
      %31 = vector.shape_cast %30 : vector<1xf32> to vector<1x1x1xf32>
      %32 = vector.extract %31[0, 0, 0] : f32 from vector<1x1x1xf32>
      %33 = vector.broadcast %32 : f32 to vector<1x1xf32>
      %cst_16 = arith.constant 0.000000e+00 : f32
      %34 = vector.broadcast %cst_16 : f32 to vector<8x128xf32>
      %35 = arith.select %19, %5, %34 : vector<8x128xi1>, vector<8x128xf32>
      %36 = vector.shape_cast %35 : vector<8x128xf32> to vector<1x8x128xf32>
      %cst_17 = arith.constant dense<0.000000e+00> : vector<1xf32>
      %37 = vector.multi_reduction <add>, %36, %cst_17 [1, 2] : vector<1x8x128xf32> to vector<1xf32>
      %38 = vector.shape_cast %37 : vector<1xf32> to vector<1x1x1xf32>
      %39 = vector.extract %38[0, 0, 0] : f32 from vector<1x1x1xf32>
      %40 = vector.broadcast %39 : f32 to vector<1x1xf32>
      %41 = tpu.concatenate %26, %33, %40 in 1 : vector<1x1xf32>, vector<1x1xf32>, vector<1x1xf32> -> vector<1x3xf32>
      %c0_18 = arith.constant 0 : index
      %42 = arith.index_cast %arg3 : i32 to index
      %c0_19 = arith.constant 0 : index
      %43 = vector.load %arg2[%c0_18, %42, %c0_19] : memref<1x8x3xf32, #tpu.memory_space<vmem>>, vector<1x1x3xf32>
      %44 = vector.shape_cast %43 : vector<1x1x3xf32> to vector<1x3xf32>
      %45 = vector.shape_cast %41 : vector<1x3xf32> to vector<1x1x3xf32>
      tpu.vector_store %arg2[%c0_18, %42, %c0_19], %45 {strides = array<i32>} : memref<1x8x3xf32, #tpu.memory_space<vmem>>, vector<1x1x3xf32>,
      %46 = vector.broadcast %26 : vector<1x1xf32> to vector<8x128xf32>
      %47 = arith.subf %1, %46 : vector<8x128xf32>
      %48 = vector.broadcast %33 : vector<1x1xf32> to vector<8x128xf32>
      %49 = arith.subf %3, %48 : vector<8x128xf32>
      %50 = vector.broadcast %40 : vector<1x1xf32> to vector<8x128xf32>
      %51 = arith.subf %5, %50 : vector<8x128xf32>
      %52 = arith.mulf %47, %47 : vector<8x128xf32>
      %53 = arith.mulf %49, %49 : vector<8x128xf32>
      %54 = arith.addf %52, %53 : vector<8x128xf32>
      %55 = arith.mulf %51, %51 : vector<8x128xf32>
      %56 = arith.addf %54, %55 : vector<8x128xf32>
      %57 = arith.minimumf %arg4, %56 : vector<8x128xf32>
      %58 = vector.shape_cast %57 : vector<8x128xf32> to vector<1x8x128xf32>
      %cst_20 = arith.constant dense<0xFF800000> : vector<1xf32>
      %59 = vector.multi_reduction <maximumf>, %58, %cst_20 [1, 2] : vector<1x8x128xf32> to vector<1xf32>
      %60 = vector.shape_cast %59 : vector<1xf32> to vector<1x1x1xf32>
      %61 = vector.extract %60[0, 0, 0] : f32 from vector<1x1x1xf32>
      %62 = vector.broadcast %61 : f32 to vector<8x128xf32>
      %63 = arith.cmpf oeq, %57, %62 : vector<8x128xf32>
      %c1024_i32 = arith.constant 1024 : i32
      %64 = vector.broadcast %c1024_i32 : i32 to vector<8x128xi32>
      %65 = arith.select %63, %10, %64 : vector<8x128xi1>, vector<8x128xi32>
      %66 = vector.shape_cast %65 : vector<8x128xi32> to vector<1x8x128xi32>
      %cst_21 = arith.constant dense<2147483647> : vector<1xi32>
      %67 = vector.multi_reduction <minsi>, %66, %cst_21 [1, 2] : vector<1x8x128xi32> to vector<1xi32>
      %68 = vector.shape_cast %67 : vector<1xi32> to vector<1x1x1xi32>
      %69 = vector.extract %68[0, 0, 0] : i32 from vector<1x1x1xi32>
      scf.yield %57, %69 : vector<8x128xf32>, i32
    }
    %c8_i32_11 = arith.constant 8 : i32
    return
  }
  func.func @transform_0(%arg0: i32) -> (i32, i32, i32, i32) {
    %c0_i32 = arith.constant 0 : i32
    %c0_i32_0 = arith.constant 0 : i32
    %c0_i32_1 = arith.constant 0 : i32
    %c0_i32_2 = arith.constant 0 : i32
    return %arg0, %c0_i32, %c0_i32_0, %c0_i32_1 : i32, i32, i32, i32
  }
  func.func @transform_1(%arg0: i32) -> (i32, i32, i32) {
    %c0_i32 = arith.constant 0 : i32
    %c0_i32_0 = arith.constant 0 : i32
    %c0_i32_1 = arith.constant 0 : i32
    return %arg0, %c0_i32, %c0_i32_0 : i32, i32, i32
  }
}

</mosaic_0001>

<bundles_post_ra>
// kernel: tpu_custom_call.1
= control target key start
LH: loop header
LB: loop body
LE: loop exit
PB: predicated region body
PF: predicated region fallthrough
CT: control target
= control target key end

     0   :  { %6 = vsyncpa [#allocation3], 0  ;;  %s660_s0 = inlined_call_operand.hbm [shape: f32[2,3,8,128], index: 0, kind: input, shape index: {}]   ;;  %s661_s1 = inlined_call_operand.vmem [shape: f32[2,8,3], index: 1, kind: output, shape index: {}]  }
   0x1   :  { %8 = vsyncpa [#allocation3 + $0x1], 0  ;;  %s513_s6 = smov 0   ;;  %s515_s7 = smov 0  }
   0x2   :  { %s517_s8 = smov 0   ;;  %s519_s9 = smov 0  }
   0x3 LB: > { %s532_s10 = sadd.s32 4294967295, %s485_s9   ;;  %s535_s11 = sadd.s32 1, %s485_s9   ;;  %s485_s9 = sphi %s519_s9, %s668_s9   ;;  %s481_s8 = sphi %s517_s8, %s667_s8   ;;  %s477_s7 = sphi %s515_s7, %s666_s7   ;;  %s473_s6 = sphi %s513_s6, %s665_s6  }
   0x4   : > { %s18_s12 = ssub.s32 %s485_s9, %s535_s11  ;;  %s21_s13 = sadd.s32 1, %s481_s8 }
   0x5   : > { %p19_p0 = scmp.eq.s32.totalorder %s18_s12, 0  ;;  %p28_p1 = scmp.ne.s32.totalorder %s481_s8, %s477_s7 }
   0x6   : > { %p29_p2 = scmp.eq.s32.totalorder %s485_s9, 0  ;;  %p34_p3 = scmp.ne.s32.totalorder %s477_s7, %s473_s6 }
   0x7   : > { %s545_s14 = scalar_select %p19_p0, %s481_s8, %s21_s13  }
   0x8   : > { %p30_p4 = por %p29_p2, %p28_p1  ;;  %p35_p5 = scmp.eq.s32.totalorder %s532_s10, 0 }
   0x9   : > { %p349_p6 = scmp.lt.s32.totalorder %s485_s9, 2  ;;  %s84_s16 = sand.u32 1, %s481_s8  }
   0xa   : > { %p549_p7 = por %p35_p5, %p34_p3  ;;  %s330_s17 = smul.u32 24, %s84_s16 }
   0xb   : > { %s331_s18 = smul.u32 384, %s485_s9  ;;  %p555_p8 = pnand %p349_p6, %p30_p4 }
   0xc   : > { %s88_s23 = scalar_lea.vmem [#allocation2], %s330_s17  ;;  %s567_s25 = scalar_lea.sflag [#allocation3], %s84_s16 }
   0xd   : > { %s562_s22 = scalar_lea.hbm %s660_s0, %s331_s18  ;;  %s95_s24 = sshll.u32 %s88_s23, 4  ;;  %s564_s24 = int_to_ptr.vmem [resolvable:$true] %s95_s24 }
   0xe   : > { %s409_s26 = scalar_lea.hbm %s562_s22, 384  ;;  %p411_p11 = pneg %p555_p8 }
   0xf   : > { %p410_p10 = scmp.ne.s32.totalorder %s562_s22, %s409_s26  ;;  %s414_s29 = scalar_lea.hbm %s660_s0, 768 }
  0x10   : > { %p415_p0 = scmp.lt.u32.totalorder %s562_s22, %s660_s0  ;;  %p416_p1 = scmp.lt.u32.totalorder %s414_s29, %s409_s26 }
  0x11   : > { %p412_p12 = pnand %p411_p11, %p410_p10  ;;  %p418_p3 = scmp.lt.u32.totalorder %s409_s26, %s562_s22 }
  0x12   : > { %p417_p2 = por %p416_p1, %p415_p0 }
  0x13   : > { %p413_p13 = pneg %p412_p12 }
  0x14   : > { %p419_p4 = por %p418_p3, %p417_p2 }
  0x16   : > { %p420_p5 = pnand %p419_p4, %p413_p13 }
  0x18   : > { %423 = shalt.err (!%p420_p5)
}
  0x19   : > { %s424_s3 = scalar_lea.vmem %s564_s24, 384  ;;  %s499_s4 = smov [#allocation2]  }
  0x1a   : > { %p425_p6 = scmp.ne.s32.totalorder %s564_s24, %s424_s3  ;;  %s429_s5 = sshll.u32 %s499_s4, 4  ;;  %s430_s5 = int_to_ptr.vmem [resolvable:$false] %s429_s5 }
  0x1b   : > { %s431_s6 = scalar_lea.vmem %s430_s5, 768  ;;  %p432_p9 = scmp.lt.s32.totalorder %s564_s24, %s430_s5 }
  0x1c   : > { %p427_p10 = pnand %p425_p6, %p411_p11  ;;  %p433_p0 = scmp.lt.s32.totalorder %s431_s6, %s424_s3 }
  0x1e   : > { %p428_p12 = pneg %p427_p10  ;;  %p434_p1 = por %p433_p0, %p432_p9 }
  0x20   : > { %p435_p2 = pnand %p434_p1, %p428_p12 }
  0x22   : > { %438 = shalt.err (!%p435_p2)
}
  0x23   : > { %s500_s12 = smov 128   ;;  %s501_s13 = smov 8  }
  0x24   : > { %348 = dma.hbm_to_vmem [thread:$0]  (!%p555_p8), %s562_s22, 384, %s564_s24, %s567_s25, %s500_s12, %s500_s12, %s501_s13  }
  0x25   : > { %p103_p11 = scmp.lt.s32.totalorder %s485_s9, 3  ;;  %p664_p13 = scmp.ge.s32.totalorder %s485_s9, 1 }
  0x27   : > { %p104_p3 = pnand %p664_p13, %p103_p11 }
  0x28   : > { %s109_s16 = sand.u32 (!%p104_p3), 1, %s477_s7  }
  0x29   : > { %107 = sbr.rel (%p104_p3) target bundleno = 844 (0x34c), region = 24  ;;  %s110_s18 = scalar_lea.sflag (!%p104_p3), [#allocation3], %s109_s16 }
  0x2a   : > { %s332_s17 = smul.u32 (!%p104_p3), 24, %s109_s16 }
  0x2c   : > { %s113_s20 = scalar_lea.vmem (!%p104_p3), [#allocation2], %s332_s17 }
  0x30   : > { %468 = dma.done.wait (%p549_p7), %s110_s18, 384  }
  0x31   : > { %470 = vsyncadd (%p549_p7), %s110_s18, 4294966912  ;;  %p131_p9 = scmp.lt.s32.totalorder %s532_s10, 1  ;;  %v140_v0 = vlaneseq  ;;  %v612_v5 = vld [vmem:[%s113_s20] sm:$0xff]  ;;  %v614_v6 = vld [vmem:[%s113_s20 + $0x8] sm:$0xff]  ;;  %v502_v8 = vmov -1.0   ;;  %s619_s15 = smov 0  }
  0x32   : > { %v616_v7 = vld [vmem:[%s113_s20 + $0x10] sm:$0xff] }
  0x33   : > { %s670_s10 = smov (!%p131_p9, %s532_s10), 1  ;;  %v141_v1 = vshrl.u32 %v140_v0, 7  ;;  %v144_v2 = vand.u32 127, %v140_v0 }
  0x34   : > { %s325_s9 = sshll.u32 %s670_s10, 3  ;;  %s623_s10 = smov 0  }
  0x35   : > { %v142_v3 = vmul.u32 128, %v141_v1  ;;  %s608_s22 = scalar_lea.vmem %s661_s1, %s325_s9 }
  0x37   : > { %v610_v4 = vadd.s32 %v144_v2, %v142_v3 }
  0x39   : > { %vm146_vm0 = vcmp.lt.s32.totalorder %v610_v4, 64 }
  0x3a   : > { %v147_v9 = vsel %vm146_vm0, inf, %v502_v8  }
  0x3b LB: >> { %v156_v10 = vstv %s489_s15  ;;  %vm191_vm2 = vcmask 7168   ;;  %vm193_vm3 = vcmask 15360   ;;  %s195_s26 = scalar_lea.vmem %s608_s22, %s497_s10  ;;  %vm196_vm4 = vcmask 16384   ;;  %s153_s10 = sadd.s32 1, %s497_s10   ;;  %s497_s10 = sphi %s623_s10, %s153_s10   ;;  %v493_v9 = vphi %v147_v9, %v206_v9   ;;  %s489_s15 = sphi %s619_s15, %s342_s15  }
  0x3c   : >> { %vm157_vm1 = vcmp.eq.s32.totalorder %v610_v4, %v156_v10  ;;  %p150_p7 = scmp.ge.s32.totalorder %s153_s10, 8  }
  0x3d   : >> { %v180_v11 = vsel %vm157_vm1, %v616_v7, 0.0  ;;  %v158_v12 = vsel %vm157_vm1, %v612_v5, 0.0  ;;  %v169_v13 = vsel %vm157_vm1, %v614_v6, 0.0 }
  0x3e   : >> { %181 = vadd.xlane.f32.xlu1 %v180_v11  ;;  %159 = vadd.xlane.f32.xlu0 %v158_v12 }
  0x42   : >> { %170 = vadd.xlane.f32.xlu0 %v169_v13 }
  0xcb   : >> { %v182_v14 = vpop.xlane.xlu1 %181  ;;  %v160_v15 = vpop.xlane.xlu0 %159 }
  0xcc   : >> { %v183_v16 = vrot.slane %v182_v14, 4  ;;  %v161_v17 = vrot.slane %v160_v15, 4 }
  0xce   : >> { %v184_v18 = vadd.f32 %v183_v16, %v182_v14  ;;  %v162_v19 = vadd.f32 %v161_v17, %v160_v15 }
  0xcf   : >> { %v171_v20 = vpop.xlane.xlu0 %170 }
  0xd0   : >> { %v185_v21 = vrot.slane %v184_v18, 2  ;;  %v163_v22 = vrot.slane %v162_v19, 2  ;;  %v172_v23 = vrot.slane %v171_v20, 4 }
  0xd2   : >> { %v173_v24 = vadd.f32 %v172_v23, %v171_v20  ;;  %v164_v25 = vadd.f32 %v163_v22, %v162_v19  ;;  %v186_v26 = vadd.f32 %v185_v21, %v184_v18 }
  0xd4   : >> { %v174_v27 = vrot.slane %v173_v24, 2  ;;  %v165_v28 = vrot.slane %v164_v25, 1  ;;  %v187_v31 = vrot.slane %v186_v26, 1 }
  0xd6   : >> { %v166_v29 = vadd.f32 %v165_v28, %v164_v25  ;;  %v175_v30 = vadd.f32 %v174_v27, %v173_v24  ;;  %v188_v34 = vadd.f32 %v187_v31, %v186_v26 }
  0xd8   : >> { %333 = vpush %v166_v29  ;;  %v176_v32 = vrot.slane %v175_v30, 1 }
  0xda   : >> { %v177_v33 = vadd.f32 %v176_v32, %v175_v30 }
  0xdc   : >> { %335 = vpush %v177_v33 }
  0xdd   : >> { %337 = vpush %v188_v34 }
 0x109   : >> { %s334_s23 = spop %333 }
 0x10a   : >> { %v168_v35 = vstv %s334_s23 }
 0x10b   : >> { %v198_v36 = vsub.f32 %v612_v5, %v168_v35 }
 0x10d   : >> { %s336_s24 = spop %335  ;;  %v201_v43 = vmul.f32 %v198_v36, %v198_v36 }
 0x10e   : >> { %v179_v37 = vstv %s336_s24  ;;  %s338_s25 = spop %337 }
 0x10f   : >> { %v192_v38 = vsel %vm191_vm2, %v168_v35, %v179_v37  ;;  %v199_v39 = vsub.f32 %v614_v6, %v179_v37  ;;  %v190_v40 = vstv %s338_s25 }
 0x110   : >> { %v194_v41 = vsel %vm193_vm3, %v192_v38, %v190_v40  ;;  %v200_v42 = vsub.f32 %v616_v7, %v190_v40 }
 0x111   : >> { %v202_v44 = vmul.f32 %v199_v39, %v199_v39  ;;  %197 = vst.msk [vmem:[%s195_s26] sm:$0x1] %vm196_vm4, %v194_v41 }
 0x112   : >> { %v204_v46 = vmul.f32 %v200_v42, %v200_v42 }
 0x113   : >> { %v203_v45 = vadd.f32 %v202_v44, %v201_v43 }
 0x115   : >> { %v205_v47 = vadd.f32 %v204_v46, %v203_v45 }
 0x117   : >> { %v206_v9 = vmin.f32 %v493_v9, %v205_v47  }
 0x119   : >> { %207 = vmax.xlane.f32.xlu1 %v206_v9 }
 0x1a6   : >> { %v208_v48 = vpop.xlane.xlu1 %207 }
 0x1a7   : >> { %v209_v49 = vrot.slane %v208_v48, 4 }
 0x1a9   : >> { %v210_v50 = vmax.f32 %v208_v48, %v209_v49 }
 0x1ab   : >> { %v211_v51 = vrot.slane %v210_v50, 2 }
 0x1ad   : >> { %v212_v52 = vmax.f32 %v210_v50, %v211_v51 }
 0x1af   : >> { %v213_v53 = vrot.slane %v212_v52, 1 }
 0x1b1   : >> { %v214_v54 = vmax.f32 %v212_v52, %v213_v53 }
 0x1b3   : >> { %339 = vpush %v214_v54 }
 0x1e4   : >> { %s340_s27 = spop %339 }
 0x1e5   : >> { %v216_v55 = vstv %s340_s27 }
 0x1e6   : >> { %vm217_vm5 = vcmp.eq.f32.partialorder %v206_v9, %v216_v55 }
 0x1e7   : >> { %v218_v56 = vsel %vm217_vm5, %v610_v4, 1024 }
 0x1e8   : >> { %v220_v57 = vshra.s32 %v218_v56, 16  ;;  %v219_v59 = vand.u32 65535, %v218_v56 }
 0x1ea   : >> { %v222_v58 = vcvt.s32.f32 %v220_v57  ;;  %v221_v61 = vcvt.s32.f32 %v219_v59 }
 0x1ec   : >> { %223 = vmin.xlane.f32.xlu0 %v222_v58 }
 0x279   : >> { %v224_v60 = vpop.xlane.xlu0 %223 }
 0x27a   : >> { %vm225_vm6 = vcmp.eq.f32.partialorder %v222_v58, %v224_v60  ;;  %v230_v63 = vcvt.f32.s32 %v224_v60 }
 0x27b   : >> { %v226_v62 = vsel %vm225_vm6, %v221_v61, inf }
 0x27c   : >> { %227 = vmin.xlane.f32.xlu1 %v226_v62  ;;  %v231_v1 = vshll.u32 %v230_v63, 16 }
 0x309   : >> { %v228_v0 = vpop.xlane.xlu1 %227 }
 0x30a   : >> { %v229_v2 = vcvt.f32.s32 %v228_v0 }
 0x30c   : >> { %v232_v3 = vadd.s32 %v231_v1, %v229_v2 }
 0x30e   : >> { %v233_v8 = vrot.slane %v232_v3, 4 }
 0x310   : >> { %vm234_vm7 = vcmp.lt.s32.totalorder %v232_v3, %v233_v8 }
 0x311   : >> { %v235_v10 = vsel %vm234_vm7, %v232_v3, %v233_v8 }
 0x312   : >> { %v236_v11 = vrot.slane %v235_v10, 2 }
 0x314   : >> { %vm237_vm8 = vcmp.lt.s32.totalorder %v235_v10, %v236_v11 }
 0x315   : >> { %v238_v12 = vsel %vm237_vm8, %v235_v10, %v236_v11 }
 0x316   : >> { %v239_v13 = vrot.slane %v238_v12, 1 }
 0x318   : >> { %vm240_vm9 = vcmp.lt.s32.totalorder %v238_v12, %v239_v13 }
 0x319   : >> { %v241_v14 = vsel %vm240_vm9, %v238_v12, %v239_v13 }
 0x31a   : >> { %341 = vpush %v241_v14 }
 0x345   : > { %152 = sbr.rel (!%p150_p7) target bundleno = 59 (0x3b), region = 74 }
 0x34b   : >> { %s342_s15 = spop %341  }
 0x34c PF: > { %p11_p8 = scmp.ge.s32.totalorder %s535_s11, 4   ;;  %s665_s6 = smov %s477_s7 }
 0x34d   : > { %s666_s7 = smov %s481_s8  ;;  %s667_s8 = smov %s545_s14 }
 0x34e   : > { %s668_s9 = smov %s535_s11  ;;  %13 = sbr.rel (!%p11_p8) target bundleno = 3 (0x3), region = 85 }
 0x355   :  { %262 = vsyncpa [#allocation3], 1 }
 0x356   :  { %264 = vsyncpa [#allocation3 + $0x1], 1 }

</bundles_post_ra>
